<compile_context>
chip_gen: v7x
topology: tpu7x:2x2x1
jax: 0.10.0
libtpu: 0.0.40
codegen_flags: <defaults>
</compile_context>

<pallas_src>
import functools
import math

import jax
import jax.numpy as jnp
from jax.experimental import pallas as pl
from jax.experimental.pallas import tpu as pltpu


def _att_lstm_kernel(x_ref, pos_ref, w_ref, b_ref, o_ref, *, inv_sqrt_dk, dv):
    # x_ref: (TB, S, D)  pos_ref: (S, D)  w_ref: (D, 4*dv)  b_ref: (1, 4*dv)
    # o_ref: (TB, S, dv)
    TB, S, D = x_ref.shape

    x = x_ref[...].astype(jnp.float32) + pos_ref[...].astype(jnp.float32)[None]

    # One fused lane-dense projection for Q|K|V|gate on the MXU.
    proj = (jnp.dot(x.reshape(TB * S, D), w_ref[...].astype(jnp.float32),
                    preferred_element_type=jnp.float32)
            + b_ref[...].astype(jnp.float32))
    proj = proj.reshape(TB, S, 4 * dv)

    q = proj[:, :, 0 * dv:1 * dv] * inv_sqrt_dk   # fold 1/sqrt(dk) into Q
    k = proj[:, :, 1 * dv:2 * dv]
    v = proj[:, :, 2 * dv:3 * dv]
    gate = jax.nn.sigmoid(proj[:, :, 3 * dv:4 * dv])

    # Batched scores = (Q/sqrt(dk)) @ K^T   ("NT" contraction, no transpose).
    scores = jnp.einsum('bqd,bkd->bqk', q, k,
                        preferred_element_type=jnp.float32)

    # Numerically stable softmax along the key axis (nn.Softmax(dim=2)).
    scores = scores - jnp.max(scores, axis=-1, keepdims=True)
    e = jnp.exp(scores)
    inv = pl.reciprocal(jnp.sum(e, axis=-1, keepdims=True), approx=True)
    attn = e * inv

    out = jnp.einsum('bqk,bkd->bqd', attn, v,
                     preferred_element_type=jnp.float32)
    o_ref[...] = (gate * out).astype(o_ref.dtype)


def make_positional_encoding(max_len, d_model):
    """Sinusoidal encoding identical to the PyTorch PositionalEncoding module."""
    pos = jnp.arange(max_len, dtype=jnp.float32)[:, None]
    two_i = jnp.arange(0, d_model, 2, dtype=jnp.float32)
    angles = pos / (10000.0 ** (two_i / d_model))
    enc = jnp.zeros((max_len, d_model), jnp.float32)
    enc = enc.at[:, 0::2].set(jnp.sin(angles))
    enc = enc.at[:, 1::2].set(jnp.cos(angles))
    return enc


def att_lstm_forward(x, pos_enc, wq, bq, wk, bk, wv, bv, wg, bg,
                     *, dk, block_b=8):
    """Fused att_lstm forward.  x: (B, S, d_model) -> (B, S, dv)."""
    B, S, D = x.shape
    dv = wq.shape[1]

    # Fuse the four projections: (D, 4*dv) weight + (1, 4*dv) bias.
    w_fused = jnp.concatenate([wq, wk, wv, wg], axis=1)
    b_fused = jnp.concatenate([bq, bk, bv, bg], axis=0).reshape(1, 4 * dv)
    pos = pos_enc[:S].astype(jnp.float32)

    # Batch-block size: as large as reasonable, but keep >= 2 grid steps when
    # B >= 2 so v7x can shard the "parallel" axis across both TensorCores.
    tb = max(1, min(block_b, B, pl.cdiv(B, 2) if B > 1 else 1))
    grid_b = pl.cdiv(B, tb)
    b_pad = grid_b * tb
    if b_pad != B:
        x = jnp.pad(x, ((0, b_pad - B), (0, 0), (0, 0)))

    kernel = functools.partial(_att_lstm_kernel,
                               inv_sqrt_dk=1.0 / math.sqrt(dk), dv=dv)

    out = pl.pallas_call(
        kernel,
        out_shape=jax.ShapeDtypeStruct((b_pad, S, dv), x.dtype),
        grid_spec=pltpu.PrefetchScalarGridSpec(
            num_scalar_prefetch=0,
            grid=(grid_b,),
            in_specs=[
                pl.BlockSpec((tb, S, D), lambda b: (b, 0, 0)),    # X block
                pl.BlockSpec((S, D), lambda b: (0, 0)),           # pos enc
                pl.BlockSpec((D, 4 * dv), lambda b: (0, 0)),      # fused W
                pl.BlockSpec((1, 4 * dv), lambda b: (0, 0)),      # fused b
            ],
            out_specs=pl.BlockSpec((tb, S, dv), lambda b: (b, 0, 0)),
        ),
        compiler_params=pltpu.CompilerParams(
            dimension_semantics=("parallel",),
        ),
    )(x, pos, w_fused, b_fused)

    return out[:B] if b_pad != B else out


def att_lstm_ref(x, pos_enc, wq, bq, wk, bk, wv, bv, wg, bg, *, dk):
    """Pure-JAX reference (high precision) for verification."""
    hi = jax.lax.Precision.HIGHEST
    x = x.astype(jnp.float32) + pos_enc[None, :x.shape[1], :]
    q = jnp.einsum('bsd,de->bse', x, wq, precision=hi) + bq
    k = jnp.einsum('bsd,de->bse', x, wk, precision=hi) + bk
    v = jnp.einsum('bsd,de->bse', x, wv, precision=hi) + bv
    gate = jax.nn.sigmoid(jnp.einsum('bsd,de->bse', x, wg, precision=hi) + bg)
    scores = jnp.einsum('bqe,bke->bqk', q, k, precision=hi) / math.sqrt(dk)
    attn = jax.nn.softmax(scores, axis=-1)
    out = jnp.einsum('bqk,bke->bqe', attn, v, precision=hi)
    return gate * out


if __name__ == "__main__":
    key = jax.random.PRNGKey(0)
    B, S = 4, 8
    d_model, dk, dv = 32, 32, 32
    max_len = 201

    keys = jax.random.split(key, 9)
    x = jax.random.normal(keys[0], (B, S, d_model), dtype=jnp.float32)

    # Deterministic parameter init (nn.Linear-style uniform range).
    bound = 1.0 / math.sqrt(d_model)

    def u(k, shape):
        return jax.random.uniform(k, shape, jnp.float32, -bound, bound)

    wq, bq = u(keys[1], (d_model, dv)), u(keys[2], (dv,))
    wk, bk = u(keys[3], (d_model, dv)), u(keys[4], (dv,))
    wv, bv = u(keys[5], (d_model, dv)), u(keys[6], (dv,))
    wg, bg = u(keys[7], (d_model, dv)), u(keys[8], (dv,))

    pos_enc = make_positional_encoding(max_len, d_model)

    y = att_lstm_forward(x, pos_enc, wq, bq, wk, bk, wv, bv, wg, bg, dk=dk)
    y = jax.block_until_ready(y)

    y_ref = att_lstm_ref(x, pos_enc, wq, bq, wk, bk, wv, bv, wg, bg, dk=dk)
    assert y.shape == (B, S, dv) and y.dtype == x.dtype
    # Tolerance loosened vs. the f32-exact version because the softmax
    # normalization uses the EUP approx reciprocal.
    assert jnp.allclose(y, y_ref, atol=1e-2, rtol=1e-2), "mismatch vs reference"

    print("KERNEL_OK")
</pallas_src>

<mosaic_0001>
module attributes {stable_mosaic.version = 11 : i64} {
  func.func @_att_lstm_kernel(%arg0: i32, %arg1: memref<2x8x32xf32, #tpu.memory_space<vmem>>, %arg2: memref<8x32xf32, #tpu.memory_space<vmem>>, %arg3: memref<32x128xf32, #tpu.memory_space<vmem>>, %arg4: memref<1x128xf32, #tpu.memory_space<vmem>>, %arg5: memref<2x8x32xf32, #tpu.memory_space<vmem>>) attributes {dimension_semantics = [#tpu.dimension_semantics<parallel>], iteration_bounds = array<i64: 2>, scalar_prefetch = 0 : i64, scratch_operands = 0 : i64, tpu.core_type = #tpu.core_type<tc>, window_params = [{transform_indices = @transform_0, window_bounds = array<i64: 2, 8, 32>}, {pipeline_mode = #tpu.pipeline_mode<synchronous>, transform_indices = @transform_1, window_bounds = array<i64: 8, 32>}, {pipeline_mode = #tpu.pipeline_mode<synchronous>, transform_indices = @transform_2, window_bounds = array<i64: 32, 128>}, {pipeline_mode = #tpu.pipeline_mode<synchronous>, transform_indices = @transform_3, window_bounds = array<i64: 1, 128>}, {transform_indices = @transform_4, window_bounds = array<i64: 2, 8, 32>}]} {
    %c0 = arith.constant 0 : index
    %c0_0 = arith.constant 0 : index
    %c0_1 = arith.constant 0 : index
    %0 = vector.load %arg1[%c0, %c0_0, %c0_1] : memref<2x8x32xf32, #tpu.memory_space<vmem>>, vector<2x8x32xf32>
    %c0_2 = arith.constant 0 : index
    %c0_3 = arith.constant 0 : index
    %1 = vector.load %arg2[%c0_2, %c0_3] : memref<8x32xf32, #tpu.memory_space<vmem>>, vector<8x32xf32>
    %2 = vector.shape_cast %1 : vector<8x32xf32> to vector<1x8x32xf32>
    %3 = vector.broadcast %2 : vector<1x8x32xf32> to vector<2x8x32xf32>
    %4 = arith.addf %0, %3 : vector<2x8x32xf32>
    %5 = vector.shape_cast %4 : vector<2x8x32xf32> to vector<16x32xf32>
    %c0_4 = arith.constant 0 : index
    %c0_5 = arith.constant 0 : index
    %6 = vector.load %arg3[%c0_4, %c0_5] : memref<32x128xf32, #tpu.memory_space<vmem>>, vector<32x128xf32>
    %cst = arith.constant dense<0.000000e+00> : vector<16x128xf32>
    %7 = tpu.matmul %5, %6, %cst {dimension_numbers = #tpu.dot_dimension_numbers<[1], [0], [0], [1], [0, 0, 1, 1], [], []>} : vector<16x32xf32>, vector<32x128xf32>, vector<16x128xf32> -> vector<16x128xf32>
    %c0_6 = arith.constant 0 : index
    %c0_7 = arith.constant 0 : index
    %8 = vector.load %arg4[%c0_6, %c0_7] : memref<1x128xf32, #tpu.memory_space<vmem>>, vector<1x128xf32>
    %9 = vector.broadcast %8 : vector<1x128xf32> to vector<16x128xf32>
    %10 = arith.addf %7, %9 : vector<16x128xf32>
    %11 = vector.shape_cast %10 : vector<16x128xf32> to vector<2x8x128xf32>
    %12 = vector.extract_strided_slice %11 {offsets = [0, 0, 0], sizes = [2, 8, 32], strides = [1, 1, 1]} : vector<2x8x128xf32> to vector<2x8x32xf32>
    %cst_8 = arith.constant 0.176776692 : f32
    %13 = vector.broadcast %cst_8 : f32 to vector<2x8x32xf32>
    %14 = arith.mulf %12, %13 : vector<2x8x32xf32>
    %15 = vector.extract_strided_slice %11 {offsets = [0, 0, 32], sizes = [2, 8, 32], strides = [1, 1, 1]} : vector<2x8x128xf32> to vector<2x8x32xf32>
    %16 = vector.extract_strided_slice %11 {offsets = [0, 0, 64], sizes = [2, 8, 32], strides = [1, 1, 1]} : vector<2x8x128xf32> to vector<2x8x32xf32>
    %17 = vector.extract_strided_slice %11 {offsets = [0, 0, 96], sizes = [2, 8, 32], strides = [1, 1, 1]} : vector<2x8x128xf32> to vector<2x8x32xf32>
    %18 = arith.negf %17 : vector<2x8x32xf32>
    %19 = math.exp %18 : vector<2x8x32xf32>
    %cst_9 = arith.constant 1.000000e+00 : f32
    %20 = vector.broadcast %cst_9 : f32 to vector<2x8x32xf32>
    %21 = arith.addf %20, %19 : vector<2x8x32xf32>
    %22 = arith.divf %20, %21 : vector<2x8x32xf32>
    "tpu.trace_start"() <{level = 10 : i32, message = "bqd,bkd->bqk"}> : () -> ()
    %cst_10 = arith.constant dense<0.000000e+00> : vector<2x8x8xf32>
    %23 = tpu.matmul %14, %15, %cst_10 {dimension_numbers = #tpu.dot_dimension_numbers<[2], [2], [1], [1], [0, 0, 0, 1, 1, 1], [0], [0]>} : vector<2x8x32xf32>, vector<2x8x32xf32>, vector<2x8x8xf32> -> vector<2x8x8xf32>
    "tpu.trace_stop"() : () -> ()
    %cst_11 = arith.constant dense<0xFF800000> : vector<2x8xf32>
    %24 = vector.multi_reduction <maximumf>, %23, %cst_11 [2] : vector<2x8x8xf32> to vector<2x8xf32>
    %25 = vector.shape_cast %24 : vector<2x8xf32> to vector<2x8x1xf32>
    %26 = vector.broadcast %25 : vector<2x8x1xf32> to vector<2x8x8xf32>
    %27 = arith.subf %23, %26 : vector<2x8x8xf32>
    %28 = math.exp %27 : vector<2x8x8xf32>
    %cst_12 = arith.constant dense<0.000000e+00> : vector<2x8xf32>
    %29 = vector.multi_reduction <add>, %28, %cst_12 [2] : vector<2x8x8xf32> to vector<2x8xf32>
    %30 = vector.shape_cast %29 : vector<2x8xf32> to vector<2x8x1xf32>
    %31 = tpu.reciprocal %30 {approx = true} : vector<2x8x1xf32> -> vector<2x8x1xf32>
    %32 = vector.broadcast %31 : vector<2x8x1xf32> to vector<2x8x8xf32>
    %33 = arith.mulf %28, %32 : vector<2x8x8xf32>
    "tpu.trace_start"() <{level = 10 : i32, message = "bqk,bkd->bqd"}> : () -> ()
    %cst_13 = arith.constant dense<0.000000e+00> : vector<2x8x32xf32>
    %34 = tpu.matmul %33, %16, %cst_13 {dimension_numbers = #tpu.dot_dimension_numbers<[2], [1], [1], [2], [0, 0, 0, 1, 1, 2], [0], [0]>} : vector<2x8x8xf32>, vector<2x8x32xf32>, vector<2x8x32xf32> -> vector<2x8x32xf32>
    "tpu.trace_stop"() : () -> ()
    %35 = arith.mulf %22, %34 : vector<2x8x32xf32>
    %c0_14 = arith.constant 0 : index
    %c0_15 = arith.constant 0 : index
    %c0_16 = arith.constant 0 : index
    %36 = vector.load %arg5[%c0_14, %c0_15, %c0_16] : memref<2x8x32xf32, #tpu.memory_space<vmem>>, vector<2x8x32xf32>
    tpu.vector_store %arg5[%c0_14, %c0_15, %c0_16], %35 {strides = array<i32>} : memref<2x8x32xf32, #tpu.memory_space<vmem>>, vector<2x8x32xf32>,
    return
  }
  func.func @transform_0(%arg0: i32) -> (i32, i32, i32) {
    %c0_i32 = arith.constant 0 : i32
    %c0_i32_0 = arith.constant 0 : i32
    %c0_i32_1 = arith.constant 0 : i32
    return %arg0, %c0_i32, %c0_i32_0 : i32, i32, i32
  }
  func.func @transform_1(%arg0: i32) -> (i32, i32) {
    %c0_i32 = arith.constant 0 : i32
    %c0_i32_0 = arith.constant 0 : i32
    %c0_i32_1 = arith.constant 0 : i32
    return %c0_i32, %c0_i32_0 : i32, i32
  }
  func.func @transform_2(%arg0: i32) -> (i32, i32) {
    %c0_i32 = arith.constant 0 : i32
    %c0_i32_0 = arith.constant 0 : i32
    %c0_i32_1 = arith.constant 0 : i32
    return %c0_i32, %c0_i32_0 : i32, i32
  }
  func.func @transform_3(%arg0: i32) -> (i32, i32) {
    %c0_i32 = arith.constant 0 : i32
    %c0_i32_0 = arith.constant 0 : i32
    %c0_i32_1 = arith.constant 0 : i32
    return %c0_i32, %c0_i32_0 : i32, i32
  }
  func.func @transform_4(%arg0: i32) -> (i32, i32, i32) {
    %c0_i32 = arith.constant 0 : i32
    %c0_i32_0 = arith.constant 0 : i32
    %c0_i32_1 = arith.constant 0 : i32
    return %arg0, %c0_i32, %c0_i32_0 : i32, i32, i32
  }
}

</mosaic_0001>

<bundles_post_ra>
// kernel: tpu_custom_call.1
= control target key start
LH: loop header
LB: loop body
LE: loop exit
PB: predicated region body
PF: predicated region fallthrough
CT: control target
= control target key end

     0   :  { %s1452_s0 = inlined_call_operand.hbm [shape: f32[4,8,32], index: 0, kind: input, shape index: {}]   ;;  %s1453_s1 = inlined_call_operand.hbm [shape: f32[8,32], index: 1, kind: input, shape index: {}]   ;;  %s1454_s2 = inlined_call_operand.hbm [shape: f32[32,128], index: 2, kind: input, shape index: {}]   ;;  %s1455_s3 = inlined_call_operand.vmem [shape: f32[1,128], index: 3, kind: input, shape index: {}]   ;;  %s1456_s4 = inlined_call_operand.hbm [shape: f32[4,8,32], index: 4, kind: output, shape index: {}]  }
   0x1   :  { %1462 = sst [smem:[#allocation12_spill]] %s1453_s1 }
   0x2   :  { %9 = vsyncpa [#allocation3], 0 }
   0x3   :  { %11 = vsyncpa [#allocation3 + $0x1], 0 }
   0x4   :  { %12 = vsyncpa [#allocation6], 0 }
   0x5   :  { %13 = vsyncpa [#allocation4], 0 }
   0x6   :  { %15 = vsyncpa [#allocation4 + $0x1], 0  ;;  %s1186_s15 = smov 0   ;;  %s1188_s16 = smov 0  }
   0x7   :  { %s1190_s17 = smov 0   ;;  %s1192_s18 = smov 0  }
   0x8 LB: > { %s1207_s19 = sadd.s32 4294967295, %s1146_s18   ;;  %s814_s20 = sadd.s32 4294967294, %s1146_s18   ;;  %s1146_s18 = sphi %s1192_s18, %s1483_s18   ;;  %s1142_s17 = sphi %s1190_s17, %s1482_s17   ;;  %s1138_s16 = sphi %s1188_s16, %s1481_s16   ;;  %s1134_s15 = sphi %s1186_s15, %s1480_s15  }
   0x9   : > { %s1211_s21 = sadd.s32 1, %s1146_s18   ;;  %s28_s22 = sadd.s32 1, %s1142_s17 }
   0xa   : > { %s25_s23 = ssub.s32 %s1146_s18, %s1211_s21  ;;  %p35_p0 = scmp.ne.s32.totalorder %s1142_s17, %s1138_s16 }
   0xb   : > { %p26_p1 = scmp.eq.s32.totalorder %s25_s23, 0  ;;  %p36_p2 = scmp.eq.s32.totalorder %s1146_s18, 0 }
   0xc   : > { %p41_p3 = scmp.ne.s32.totalorder %s1138_s16, %s1134_s15  ;;  %p1457_p4 = scmp.eq.s32.totalorder %s1207_s19, 0 }
   0xd   : > { %s1223_s24 = scalar_select %p26_p1, %s1142_s17, %s28_s22  }
   0xe   : > { %p1225_p5 = por %p36_p2, %p35_p0  ;;  %p1231_p6 = por %p1457_p4, %p41_p3 }
   0xf   : > { %p128_p7 = scmp.eq.s32.totalorder %s1207_s19, 1  ;;  %p134_p8 = scmp.eq.s32.totalorder %s814_s20, 1 }
  0x10   : > { %s1464_s26 = scalar_select %p1231_p6, 1, 0 }
  0x11   : > { %p815_p9 = scmp.ge.s32.totalorder %s1146_s18, 1  ;;  %p141_p10 = scmp.lt.s32.totalorder %s1146_s18, 3 }
  0x12   : > { %p1238_p11 = por %p128_p7, %p35_p0  ;;  %p1242_p12 = por %p134_p8, %p41_p3 }
  0x13   : > { %p1246_p13 = pnand %p815_p9, %p141_p10  ;;  %s1148_s30 = smov [#allocation5]  }
  0x14   : > { %s1465_s27 = scalar_select %p1238_p11, 1, 0 }
  0x15   : > { %s1466_s28 = scalar_select %p1242_p12, 1, 0 }
  0x16   : > { %s1467_s29 = scalar_select %p1246_p13, 1, 0 }
  0x17   : > { %p910_p2 = pneg %p1246_p13  ;;  %s154_s5 = sshll.u32 %s1148_s30, 4  ;;  %s155_s5 = int_to_ptr.vmem [resolvable:$true] %s154_s5 }
  0x18   : > { %p927_p4 = scmp.lt.s32.totalorder %s1146_s18, 2  ;;  %p1468_p0 = scmp.eq.s32.totalorder %s1207_s19, 0 }
  0x19   : > { %s1149_s8 = smov [#allocation7]   ;;  %s1471_s1 = sld [smem:[#allocation12_spill]] }
  0x1a   : > { %p1256_p7 = pnand %p910_p2, %p1468_p0  ;;  %p1262_p3 = pnand %p927_p4, %p1225_p5 }
  0x1b   : > { %s164_s9 = sshll.u32 %s1149_s8, 4  ;;  %s1266_s9 = int_to_ptr.vmem [resolvable:$true] %s164_s9 }
  0x1c   : > { %s1470_s7 = scalar_select %p1262_p3, 1, 0 }
  0x1d   : > { %p992_p9 = pneg %p1256_p7 }
  0x1f   : > { %s990_s12 = scalar_lea.hbm %s1471_s1, 128 }
  0x20   : > { %p991_p8 = scmp.ne.s32.totalorder %s1471_s1, %s990_s12  ;;  %p997_p10 = scmp.lt.u32.totalorder %s990_s12, %s1471_s1 }
  0x22   : > { %p993_p4 = pnand %p992_p9, %p991_p8 }
  0x24   : > { %p994_p5 = pneg %p993_p4 }
  0x26   : > { %p999_p2 = pnand %p997_p10, %p994_p5 }
  0x28   : > { %1002 = shalt.err (!%p999_p2)
}
  0x29   : > { %s1003_s23 = scalar_lea.vmem %s155_s5, 128  ;;  %p1011_p11 = scmp.lt.s32.totalorder %s155_s5, %s155_s5 }
  0x2a   : > { %p1004_p0 = scmp.ne.s32.totalorder %s155_s5, %s1003_s23  ;;  %p1012_p6 = scmp.lt.s32.totalorder %s1003_s23, %s1003_s23 }
  0x2c   : > { %p1006_p1 = pnand %p1004_p0, %p992_p9  ;;  %p1013_p13 = por %p1012_p6, %p1011_p11 }
  0x2e   : > { %p1007_p12 = pneg %p1006_p1 }
  0x30   : > { %p1014_p3 = pnand %p1013_p13, %p1007_p12 }
  0x32   : > { %1017 = shalt.err (!%p1014_p3)
}
  0x33   : > { %913 = dma.hbm_to_vmem [thread:$0]  (!%p1256_p7), %s1471_s1, 128, %s155_s5, [#allocation6]  }
  0x34   : > { %s181_s8 = sand.u32 1, %s1142_s17   ;;  %s1018_s12 = scalar_lea.hbm %s1454_s2, 512 }
  0x35   : > { %p1019_p1 = scmp.ne.s32.totalorder %s1454_s2, %s1018_s12  ;;  %p1025_p12 = scmp.lt.u32.totalorder %s1018_s12, %s1454_s2 }
  0x37   : > { %p1021_p6 = pnand %p1019_p1, %p992_p9 }
  0x39   : > { %p1022_p11 = pneg %p1021_p6 }
  0x3b   : > { %p1027_p13 = pnand %p1025_p12, %p1022_p11 }
  0x3d   : > { %1030 = shalt.err (!%p1027_p13)
}
  0x3e   : > { %s1031_s5 = scalar_lea.vmem %s1266_s9, 512  ;;  %p1039_p5 = scmp.lt.s32.totalorder %s1266_s9, %s1266_s9 }
  0x3f   : > { %p1032_p3 = scmp.ne.s32.totalorder %s1266_s9, %s1031_s5  ;;  %p1040_p10 = scmp.lt.s32.totalorder %s1031_s5, %s1031_s5 }
  0x41   : > { %p1034_p8 = pnand %p1032_p3, %p992_p9  ;;  %p1041_p2 = por %p1040_p10, %p1039_p5 }
  0x43   : > { %p1035_p4 = pneg %p1034_p8 }
  0x45   : > { %p1042_p0 = pnand %p1041_p2, %p1035_p4 }
  0x47   : > { %1045 = shalt.err (!%p1042_p0)
}
  0x48   : > { %s1150_s23 = smov 128   ;;  %s1151_s25 = smov 8  }
  0x49   : > { %916 = dma.hbm_to_vmem [thread:$0]  (!%p1256_p7), %s1454_s2, 512, %s1266_s9, [#allocation6], %s1150_s23, %s1150_s23, %s1151_s25  }
  0x4a   : > { %s819_s11 = sshll.u32 %s181_s8, 4  ;;  %s843_s12 = sshll.u32 %s1146_s18, 8 }
  0x4b   : > { %s1323_s20 = scalar_lea.hbm %s1452_s0, %s843_s12  ;;  %s185_s22 = scalar_lea.vmem [#allocation2], %s819_s11 }
  0x4c   : > { %s192_s6 = sshll.u32 %s185_s22, 4  ;;  %s1327_s5 = scalar_lea.sflag [#allocation3], %s181_s8  ;;  %s1325_s6 = int_to_ptr.vmem [resolvable:$true] %s192_s6 }
  0x4d   : > { %s1046_s1 = scalar_lea.hbm %s1323_s20, 256  ;;  %p1472_p7 = scmp.ne.s32.totalorder %s1470_s7, 0 }
  0x4e   : > { %p1047_p9 = scmp.ne.s32.totalorder %s1323_s20, %s1046_s1  ;;  %s1051_s10 = scalar_lea.hbm %s1452_s0, 512 }
  0x4f   : > { %p1048_p1 = pneg %p1472_p7  ;;  %p1052_p12 = scmp.lt.u32.totalorder %s1323_s20, %s1452_s0 }
  0x50   : > { %p1053_p13 = scmp.lt.u32.totalorder %s1051_s10, %s1046_s1  ;;  %p1055_p8 = scmp.lt.u32.totalorder %s1046_s1, %s1323_s20 }
  0x51   : > { %p1049_p6 = pnand %p1048_p1, %p1047_p9 }
  0x52   : > { %p1054_p3 = por %p1053_p13, %p1052_p12 }
  0x53   : > { %p1050_p11 = pneg %p1049_p6 }
  0x54   : > { %p1056_p4 = por %p1055_p8, %p1054_p3 }
  0x56   : > { %p1057_p5 = pnand %p1056_p4, %p1050_p11 }
  0x58   : > { %1060 = shalt.err (!%p1057_p5)
}
  0x59   : > { %s1061_s8 = scalar_lea.vmem %s1325_s6, 256  ;;  %s1152_s11 = smov [#allocation2]  }
  0x5a   : > { %p1062_p10 = scmp.ne.s32.totalorder %s1325_s6, %s1061_s8  ;;  %s1066_s14 = sshll.u32 %s1152_s11, 4  ;;  %s1067_s14 = int_to_ptr.vmem [resolvable:$false] %s1066_s14 }
  0x5b   : > { %s1068_s22 = scalar_lea.vmem %s1067_s14, 512  ;;  %p1069_p9 = scmp.lt.s32.totalorder %s1325_s6, %s1067_s14 }
  0x5c   : > { %p1064_p2 = pnand %p1062_p10, %p1048_p1  ;;  %p1070_p6 = scmp.lt.s32.totalorder %s1068_s22, %s1061_s8 }
  0x5e   : > { %p1065_p0 = pneg %p1064_p2  ;;  %p1071_p12 = por %p1070_p6, %p1069_p9 }
  0x60   : > { %p1072_p13 = pnand %p1071_p12, %p1065_p0 }
  0x62   : > { %1075 = shalt.err (!%p1072_p13)
}
  0x63   : > { %920 = dma.hbm_to_vmem [thread:$0]  (!%p1472_p7), %s1323_s20, 256, %s1325_s6, %s1327_s5, %s1150_s23, %s1150_s23, %s1151_s25  }
  0x64   : > { %p1473_p1 = scmp.ne.s32.totalorder %s1467_s29, 0 }
  0x65   : > { %s1361_s1 = sand.u32 (!%p1473_p1), 1, %s1138_s16   ;;  %p1474_p11 = scmp.ne.s32.totalorder (!%p1473_p1), %s1464_s26, 0 }
  0x66   : > { %204 = sbr.rel (%p1473_p1) target bundleno = 1446 (0x5a6), region = 36  ;;  %s823_s9 = sshll.u32 (!%p1473_p1), %s1361_s1, 4 }
  0x67   : > { %s207_s30 = scalar_lea.sflag (!%p1473_p1), [#allocation3], %s1361_s1  ;;  %s210_s7 = scalar_lea.vmem (!%p1473_p1), [#allocation2], %s823_s9 }
  0x6d   : > { %1121 = dma.done.wait (%p1474_p11), %s207_s30, 256  }
  0x6e   : > { %1123 = vsyncadd (%p1474_p11), %s207_s30, 4294967040  ;;  %p1475_p7 = scmp.eq.s32.totalorder %s1207_s19, 0 }
  0x70   : > { %1125 = dma.done.wait (%p1475_p7), [#allocation6], 640   ;;  %p1476_p3 = pmov %p1475_p7 }
  0x71   : > { %v250_v0 = vld [vmem:[#allocation7] sm:$0xff]  ;;  %v251_v1 = vld [vmem:[#allocation7 + $0x8] sm:$0xff]  ;;  %v252_v2 = vld [vmem:[#allocation7 + $0x10] sm:$0xff]  ;;  %vm261_vm0 = vcmask 261120   ;;  %v1153_v11 = vmov 0.0   ;;  %vm1154_vm1 = vmmov 0  }
  0x72   : > { %1127 = vsyncadd (%p1476_p3), [#allocation6], 4294966656  ;;  %v890_v3 = vpack.c.bf16 %v251_v1, %v250_v0  ;;  %v253_v4 = vld [vmem:[#allocation7 + $0x18] sm:$0xff]  ;;  %v246_v9 = vld [vmem:[%s210_s7 + $0x8] sm:$0xff]  ;;  %870 = vmatprep.subr.mxu1 %v1153_v11  ;;  %872 = vmatprep.mubr.msk.f32.mxu1 %vm1154_vm1, %v1153_v11  ;;  %s1155_s23 = smov 96   ;;  %vm513_vm2 = vcmask 64512  }
  0x73   : > { %v245_v5 = vld [vmem:[%s210_s7] sm:$0xff]  ;;  %v894_v6 = vpack.c.bf16 %v253_v4, %v252_v2  ;;  %s1156_s25 = smov 64   ;;  %s1157_s20 = smov 32  }
  0x74   : > { %v247_v7 = vld [vmem:[#allocation5] sm:$0xff]  ;;  %891 = vmatprep.subr.bf16.mxu0 %v890_v3  ;;  %s242_s6 = scalar_lea.vmem [#allocation8], %s823_s9  ;;  %s844_s10 = sshll.u32 %s1207_s19, 8 }
  0x75   : > { %v248_v8 = vadd.f32 %v247_v7, %v245_v5  ;;  %893 = vmatpush3.bf16.msra.mxu0 %v890_v3  ;;  %v249_v10 = vadd.f32 %v247_v7, %v246_v9  ;;  %v827_v12 = vld [vmem:[%s1455_s3] ss:$0 sm:$0xff]  ;;  %s722_s5 = sshll.u32 %s242_s6, 4  ;;  %s1407_s8 = scalar_lea.hbm %s1456_s4, %s844_s10  ;;  %s1401_s5 = int_to_ptr.vmem [resolvable:$true] %s722_s5 }
  0x76   : > { %895 = vmatprep.subr.bf16.mxu0 %v894_v6  ;;  %s709_s11 = scalar_lea.sflag [#allocation4], %s1361_s1  ;;  %s1076_s14 = scalar_lea.vmem %s1401_s5, 256 }
  0x77   : > { %867 = vmatprep.mubr.msk.f32.mxu0 %vm261_vm0, %v248_v8  ;;  %p1077_p8 = scmp.ne.s32.totalorder %s1401_s5, %s1076_s14  ;;  %p1477_p4 = scmp.ne.s32.totalorder %s1465_s27, 0 }
  0x78   : > { %s1158_s19 = smov [#allocation8]  }
  0x79   : > { %897 = vmatpush3.bf16.msra.mxu0 %v894_v6  ;;  %p1078_p5 = pnand %p1077_p8, %p1477_p4  ;;  %s1080_s22 = sshll.u32 %s1158_s19, 4  ;;  %s1081_s22 = int_to_ptr.vmem [resolvable:$false] %s1080_s22 }
  0x7a   : > { %880 = vmatprep.subr.mxu0 %v1153_v11  ;;  %s1082_s9 = scalar_lea.vmem %s1081_s22, 512  ;;  %p1083_p2 = scmp.lt.s32.totalorder %s1401_s5, %s1081_s22 }
  0x7b   : > { %p1079_p10 = pneg %p1078_p5  ;;  %p1084_p0 = scmp.lt.s32.totalorder %s1082_s9, %s1076_s14 }
  0x7c   : > { %868 = vmatmul.mubr.msk.f32.vlgmr.msra.gmra.mrb[0].mxu0 %vm261_vm0, %v249_v10 }
  0x7d   : > { %882 = vmatprep.mubr.msk.f32.mxu0 %vm1154_vm1, %v1153_v11  ;;  %p1085_p9 = por %p1084_p0, %p1083_p2 }
  0x7f   : > { %p1086_p6 = pnand %p1085_p9, %p1079_p10 }
 0x14f   : > { %v869_v13 = vpop.f32.mrb[0].mxu0 }
 0x150   : > { %v334_v14 = vpop.f32.mrb[1].mxu0  ;;  %v340_v16 = vadd.f32 %v869_v13, %v827_v12 }
 0x151   : > { %v335_v15 = vadd.f32 %v827_v12, %v334_v14 }
 0x152   : > { %v344_v20 = vmul.f32 0.17677669, %v340_v16  ;;  %v831_v50 = vmul.f32 -1.442695, %v340_v16 }
 0x153   : > { %358 = vrot.lane.b32.xlu0 %v335_v15, %s1155_s23  ;;  %v343_v18 = vmul.f32 0.17677669, %v335_v15  ;;  %v830_v49 = vmul.f32 -1.442695, %v335_v15 }
 0x157   : > { %436 = vrot.lane.b32.xlu0 %v340_v16, %s1155_s23 }
 0x1c5   : > { %v359_v17 = vpop.permute.xlu0 %358 }
 0x1c6   : > { %871 = vmatpush3.xpose.msk.msra.mxu1 %vm261_vm0, %v359_v17 }
 0x1c7   : > { %875 = vmatprep.subr.mxu1 %v1153_v11 }
 0x1c9   : > { %v437_v19 = vpop.permute.xlu0 %436  ;;  %873 = vmatmul.mubr.msk.f32.vlgmr.msra.gmra.mrb[0].mxu1 %vm261_vm0, %v343_v18 }
 0x1ca   : > { %876 = vmatpush3.xpose.msk.msra.mxu1 %vm261_vm0, %v437_v19  ;;  %877 = vmatprep.mubr.msk.f32.mxu1 %vm1154_vm1, %v1153_v11 }
 0x1cb   : > { %885 = vmatprep.subr.mxu1 %v1153_v11 }
 0x1cd   : > { %878 = vmatmul.mubr.msk.f32.vlgmr.msra.gmra.mrb[2].mxu1 %vm261_vm0, %v344_v20 }
 0x1ce   : > { %887 = vmatprep.mubr.msk.f32.mxu1 %vm1154_vm1, %v1153_v11 }
 0x29c   : > { %v431_v21 = vpop.f32.mrb[0].mxu1 }
 0x29d   : > { %v874_v22 = vpop.f32.mrb[1].mxu1  ;;  %v514_v23 = vsel %vm513_vm2, %v431_v21, -inf }
 0x29e   : > { %515 = vmax.xlane.f32.xlu1 %v514_v23 }
 0x2a0   : > { %v509_v24 = vpop.f32.mrb[2].mxu1 }
 0x2a1   : > { %v879_v25 = vpop.f32.mrb[3].mxu1  ;;  %v517_v26 = vsel %vm513_vm2, %v509_v24, -inf }
 0x2a2   : > { %518 = vmax.xlane.f32.xlu1 %v517_v26 }
 0x2b3   : > { %536 = vrot.lane.b32.xlu1 %v335_v15, %s1156_s25 }
 0x32b   : > { %v516_v27 = vpop.xlane.xlu1 %515 }
 0x32c   : > { %v520_v28 = vsub.f32 %v431_v21, %v516_v27 }
 0x32e   : > { %v522_v29 = vmul.f32 1.442695, %v520_v28 }
 0x32f   : > { %v519_v30 = vpop.xlane.xlu1 %518 }
 0x330   : > { %974 = vpow2.f32 %v522_v29  ;;  %v521_v31 = vsub.f32 %v509_v24, %v519_v30 }
 0x332   : > { %v524_v32 = vmul.f32 1.442695, %v521_v31 }
 0x333   : > { %v537_v33 = vpop.permute.xlu1 %536 }
 0x334   : > { %976 = vpow2.f32 %v524_v32  ;;  %881 = vmatpush3.msra.mxu0 %v537_v33 }
 0x33a   : > { %v975_v34 = vpop.eup %974 }
 0x33b   : > { %v526_v35 = vsel %vm513_vm2, %v975_v34, 0.0 }
 0x33c   : > { %527 = vadd.xlane.f32.xlu0 %v526_v35 }
 0x33e   : > { %v977_v36 = vpop.eup %976 }
 0x33f   : > { %v529_v37 = vsel %vm513_vm2, %v977_v36, 0.0 }
 0x340   : > { %530 = vadd.xlane.f32.xlu1 %v529_v37 }
 0x351   : > { %612 = vrot.lane.b32.xlu1 %v340_v16, %s1156_s25 }
 0x3c9   : > { %v528_v38 = vpop.xlane.xlu0 %527 }
 0x3ca   : > { %978 = vrcp.f32 %v528_v38 }
 0x3cd   : > { %v531_v39 = vpop.xlane.xlu1 %530 }
 0x3ce   : > { %980 = vrcp.f32 %v531_v39 }
 0x3cf   : > { %982 = vpow2.f32 %v830_v49 }
 0x3d0   : > { %984 = vpow2.f32 %v831_v50 }
 0x3d1   : > { %v613_v40 = vpop.permute.xlu1 %612 }
 0x3d2   : > { %886 = vmatpush3.msra.mxu1 %v613_v40 }
 0x3d4   : > { %v979_v41 = vpop.eup %978 }
 0x3d5   : > { %v534_v42 = vmul.f32 %v979_v41, %v975_v34 }
 0x3d7   : > { %883 = vmatmul.mubr.msk.f32.vlgmr.msra.gmra.mrb[2].mxu0 %vm513_vm2, %v534_v42 }
 0x3d8   : > { %v981_v43 = vpop.eup %980 }
 0x3d9   : > { %v535_v44 = vmul.f32 %v981_v43, %v977_v36  ;;  %v983_v51 = vpop.eup %982 }
 0x3da   : > { %v351_v52 = vadd.f32 1.0, %v983_v51  ;;  %v985_v53 = vpop.eup %984 }
 0x3db   : > { %888 = vmatmul.mubr.msk.f32.vlgmr.msra.gmra.mrb[4].mxu1 %vm513_vm2, %v535_v44  ;;  %v352_v54 = vadd.f32 1.0, %v985_v53 }
 0x3dc   : > { %986 = vrcp.f32 %v351_v52 }
 0x3dd   : > { %988 = vrcp.f32 %v352_v54 }
 0x3e6   : > { %v987_v55 = vpop.eup %986 }
 0x3e7   : > { %v989_v58 = vpop.eup %988 }
 0x4aa   : > { %v608_v45 = vpop.f32.mrb[2].mxu0 }
 0x4ab   : > { %690 = vrot.lane.b32.xlu1 %v608_v45, %s1155_s23  ;;  %v884_v46 = vpop.f32.mrb[3].mxu0 }
 0x4ae   : > { %v684_v47 = vpop.f32.mrb[4].mxu1 }
 0x4af   : > { %692 = vrot.lane.b32.xlu1 %v684_v47, %s1155_s23  ;;  %v889_v48 = vpop.f32.mrb[5].mxu1 }
 0x51d   : > { %v691_v56 = vpop.permute.xlu1 %690 }
 0x51e   : > { %v696_v57 = vmul.f32 %v987_v55, %v691_v56 }
 0x520   : > { %700 = vrot.lane.b32.xlu0 %v696_v57, %s1157_s20 }
 0x521   : > { %v693_v59 = vpop.permute.xlu1 %692 }
 0x522   : > { %v697_v60 = vmul.f32 %v989_v58, %v693_v59 }
 0x524   : > { %702 = vrot.lane.b32.xlu1 %v697_v60, %s1157_s20 }
 0x592   : > { %v701_v61 = vpop.permute.xlu0 %700 }
 0x593   : > { %706 = vst.msk [vmem:[%s242_s6] sm:$0xff] %vm261_vm0, %v701_v61 }
 0x596   : > { %v703_v62 = vpop.permute.xlu1 %702 }
 0x597   : > { %707 = vst.msk [vmem:[%s242_s6 + $0x8] sm:$0xff] %vm261_vm0, %v703_v62 }
 0x598   : > { %1089 = shalt.err (!%p1086_p6)
}
 0x599   : > { %s1090_s30 = scalar_lea.hbm %s1407_s8, 256  ;;  %s1094_s29 = scalar_lea.hbm %s1456_s4, 512 }
 0x59a   : > { %p1091_p12 = scmp.ne.s32.totalorder %s1407_s8, %s1090_s30  ;;  %p1095_p11 = scmp.lt.u32.totalorder %s1407_s8, %s1456_s4 }
 0x59b   : > { %p1096_p7 = scmp.lt.u32.totalorder %s1094_s29, %s1090_s30  ;;  %p1098_p8 = scmp.lt.u32.totalorder %s1090_s30, %s1407_s8 }
 0x59c   : > { %p1092_p13 = pnand %p1091_p12, %p1477_p4 }
 0x59d   : > { %p1097_p3 = por %p1096_p7, %p1095_p11 }
 0x59e   : > { %p1093_p1 = pneg %p1092_p13 }
 0x59f   : > { %p1099_p5 = por %p1098_p8, %p1097_p3 }
 0x5a1   : > { %p1100_p10 = pnand %p1099_p5, %p1093_p1 }
 0x5a3   : > { %1103 = shalt.err (!%p1100_p10)
}
 0x5a4   : > { %s1159_s20 = smov 128   ;;  %s1160_s6 = smov 8  }
 0x5a5   : > { %908 = dma.vmem_to_hbm [thread:$0]  (%p1477_p4), %s1401_s5, 256, %s1407_s8, %s709_s11, %s1159_s20, %s1159_s20, %s1160_s6  }
 0x5a6 PF: > { %s737_s10 = sand.u32 1, %s1134_s15   ;;  %p1478_p2 = scmp.ne.s32.totalorder %s1466_s28, 0 }
 0x5a7   : > { %p1479_p0 = scmp.ge.s32.totalorder %s1146_s18, 2  ;;  %s738_s12 = scalar_lea.sflag [#allocation4], %s737_s10 }
 0x5a9   : > { %p922_p9 = pnand %p1479_p0, %p1478_p2 }
 0x5ab   : > { %1129 = dma.done.wait (!%p922_p9), %s738_s12, 256  }
 0x5ac   : > { %1131 = vsyncadd (!%p922_p9), %s738_s12, 4294967040  ;;  %p18_p6 = scmp.ge.s32.totalorder %s1211_s21, 4   ;;  %s1480_s15 = smov %s1138_s16 }
 0x5ad   : > { %s1481_s16 = smov %s1142_s17  ;;  %s1482_s17 = smov %s1223_s24 }
 0x5ae   : > { %s1483_s18 = smov %s1211_s21  ;;  %20 = sbr.rel (!%p18_p6) target bundleno = 8 (0x8), region = 89 }
 0x5b5   :  { %743 = vsyncpa [#allocation3], 1 }
 0x5b6   :  { %745 = vsyncpa [#allocation3 + $0x1], 1 }
 0x5b7   :  { %746 = vsyncpa [#allocation6], 1 }
 0x5b8   :  { %747 = vsyncpa [#allocation4], 1 }
 0x5b9   :  { %749 = vsyncpa [#allocation4 + $0x1], 1 }

</bundles_post_ra>
